<compile_context>
chip_gen: v7x
topology: tpu7x:2x2x1
jax: 0.10.0
libtpu: 0.0.40
codegen_flags: <defaults>
</compile_context>

<pallas_src>
import functools
import math

import numpy as np
import jax
import jax.numpy as jnp
from jax.experimental import pallas as pl
from jax.experimental.pallas import tpu as pltpu


def _drop_path_kernel(scale_ref, x_ref, o_ref):
    """out tile = x tile * per-row scale (scale is 0 or 1/keep_prob).

    scale_ref : VMEM (block_b, 1)        per-sample scale, x.dtype
    x_ref     : VMEM (block_b, block_f)
    o_ref     : VMEM (block_b, block_f)
    """
    o_ref[...] = x_ref[...] * scale_ref[...]


def drop_path(x, drop_prob=0.0, *, training=False, key=None,
              block_b=None, block_f=None):
    """Pallas DropPath.  Identity when drop_prob == 0 or not training."""
    if drop_prob == 0.0 or not training:
        return x
    if key is None:
        raise ValueError(
            "drop_path(training=True, drop_prob>0) needs an explicit PRNG key; "
            "pass a fresh key per call (fold in layer id / step).")

    keep_prob = 1.0 - float(drop_prob)
    orig_shape = x.shape
    B = int(orig_shape[0])
    F = int(np.prod(orig_shape[1:])) if x.ndim > 1 else 1
    itemsize = jnp.dtype(x.dtype).itemsize

    # Per-sample keep/drop: floor(keep_prob + U[0,1)) in {0, 1}, exactly like torch.
    u = jax.random.uniform(key, (B, 1), dtype=jnp.float32)
    keep = jnp.floor(keep_prob + u)                       # (B, 1) in {0., 1.}
    scale = (keep * (1.0 / keep_prob)).astype(x.dtype)    # 0 or 1/keep_prob

    # Lay the tensor out as a 2-D (rows, features) slab.  For tiny B, split each
    # sample's features over `r` rows so (8, 128) sublane tiles are fully used.
    sublanes = {4: 8, 2: 16, 1: 32}.get(itemsize, 8)
    r = 1
    if B < sublanes:
        cand = sublanes // math.gcd(B, sublanes)          # smallest r: B*r % sublanes == 0
        if F % cand == 0:
            r = cand
    B_eff, F_eff = B * r, F // r
    x2 = x.reshape(B_eff, F_eff)
    scale2 = jnp.repeat(scale, r, axis=0) if r > 1 else scale   # (B_eff, 1)

    # Batch tile: full batch when small (always a legal block shape), otherwise
    # 128 rows (multiple of 8) with a ragged, masked final block.
    if block_b is None:
        block_b = B_eff if B_eff <= 128 else 128
    block_b = int(min(block_b, B_eff))

    # Feature tile: dtype-aware ~4 MiB per x tile (counting sublane padding), a
    # multiple of 128.  in+out double-buffering ~16 MiB << 32 MiB VMEM limit.
    if block_f is None:
        padded_bb = ((block_b + sublanes - 1) // sublanes) * sublanes
        budget_elems = (4 * 1024 * 1024) // (itemsize * max(padded_bb, 1))
        block_f = max(128, (budget_elems // 128) * 128)
    if F_eff >= 128:
        block_f = int(min(block_f, (F_eff // 128) * 128))  # mult of 128; ragged final block
    else:
        block_f = F_eff                                    # full (tiny) feature dim
    grid = (pl.cdiv(B_eff, block_b), pl.cdiv(F_eff, block_f))

    out = pl.pallas_call(
        _drop_path_kernel,
        out_shape=jax.ShapeDtypeStruct((B_eff, F_eff), x.dtype),
        grid=grid,
        in_specs=[
            pl.BlockSpec((block_b, 1), lambda i, j: (i, 0)),        # scale: resident per B-tile
            pl.BlockSpec((block_b, block_f), lambda i, j: (i, j)),  # x
        ],
        out_specs=pl.BlockSpec((block_b, block_f), lambda i, j: (i, j)),
        compiler_params=pltpu.CompilerParams(
            dimension_semantics=("parallel", "parallel"),
            vmem_limit_bytes=32 * 1024 * 1024,
        ),
        cost_estimate=pl.CostEstimate(
            flops=B * F,
            transcendentals=0,
            bytes_accessed=2 * B * F * itemsize,
        ),
    )(scale2, x2)

    return out.reshape(orig_shape)


if __name__ == "__main__":
    root = jax.random.PRNGKey(0)
    key_x, key_mask, key_mask2 = jax.random.split(root, 3)

    B, C, H, W = 2, 4, 16, 16
    x = jax.random.normal(key_x, (B, C, H, W), jnp.float32)

    drop_prob = 0.25
    keep_prob = 1.0 - drop_prob

    # --- training path (jitted) ----------------------------------------------
    fwd = jax.jit(functools.partial(drop_path, drop_prob=drop_prob, training=True))
    out = fwd(x, key=key_mask)
    jax.block_until_ready(out)
    assert out.shape == x.shape
    assert bool(jnp.all(jnp.isfinite(out)))

    # Exact match against a pure-JAX reference using the same mask recipe.
    u_ref = jax.random.uniform(key_mask, (B, 1), dtype=jnp.float32)
    keep_ref = jnp.floor(keep_prob + u_ref)
    expected = np.asarray(x) * np.asarray(keep_ref / keep_prob).reshape(B, 1, 1, 1)
    np.testing.assert_allclose(np.asarray(out), expected, rtol=1e-6, atol=1e-6)

    # Structural correctness: every sample is either fully dropped (all zeros)
    # or kept and scaled by exactly 1/keep_prob.
    xf = np.asarray(x).reshape(B, -1)
    of = np.asarray(out).reshape(B, -1)
    for b in range(B):
        dropped = np.allclose(of[b], 0.0)
        kept = np.allclose(of[b], xf[b] / keep_prob, rtol=1e-6, atol=1e-6)
        assert dropped or kept, f"sample {b}: neither cleanly dropped nor kept"

    # --- non-128-aligned feature dim exercises the ragged final block (no pad).
    x_odd = jax.random.normal(key_x, (3, 5, 7, 9), jnp.float32)
    out_odd = drop_path(x_odd, 0.5, training=True, key=key_mask2)
    jax.block_until_ready(out_odd)
    xo = np.asarray(x_odd).reshape(3, -1)
    oo = np.asarray(out_odd).reshape(3, -1)
    for b in range(3):
        dropped = np.allclose(oo[b], 0.0)
        kept = np.allclose(oo[b], xo[b] / 0.5, rtol=1e-6, atol=1e-6)
        assert dropped or kept, f"odd sample {b}: neither cleanly dropped nor kept"

    # --- eval mode / drop_prob == 0 are exact identities (matches PyTorch). ---
    out_eval = drop_path(x, drop_prob, training=False)
    assert np.array_equal(np.asarray(out_eval), np.asarray(x))
    out_p0 = drop_path(x, 0.0, training=True)
    assert np.array_equal(np.asarray(out_p0), np.asarray(x))

    print("KERNEL_OK")
</pallas_src>

<mosaic_0001>
module attributes {stable_mosaic.version = 11 : i64} {
  func.func @_drop_path_kernel(%arg0: i32, %arg1: i32, %arg2: memref<8x1xf32, #tpu.memory_space<vmem>>, %arg3: memref<8x256xf32, #tpu.memory_space<vmem>>, %arg4: memref<8x256xf32, #tpu.memory_space<vmem>>) attributes {dimension_semantics = [#tpu.dimension_semantics<parallel>, #tpu.dimension_semantics<parallel>], iteration_bounds = array<i64: 1, 1>, scalar_prefetch = 0 : i64, scratch_operands = 0 : i64, tpu.core_type = #tpu.core_type<tc>, window_params = [{transform_indices = @transform_0, window_bounds = array<i64: 8, 1>}, {transform_indices = @transform_1, window_bounds = array<i64: 8, 256>}, {transform_indices = @transform_2, window_bounds = array<i64: 8, 256>}]} {
    %c0 = arith.constant 0 : index
    %c0_0 = arith.constant 0 : index
    %0 = vector.load %arg3[%c0, %c0_0] : memref<8x256xf32, #tpu.memory_space<vmem>>, vector<8x256xf32>
    %c0_1 = arith.constant 0 : index
    %c0_2 = arith.constant 0 : index
    %1 = vector.load %arg2[%c0_1, %c0_2] : memref<8x1xf32, #tpu.memory_space<vmem>>, vector<8x1xf32>
    %2 = vector.broadcast %1 : vector<8x1xf32> to vector<8x256xf32>
    %3 = arith.mulf %0, %2 : vector<8x256xf32>
    %c0_3 = arith.constant 0 : index
    %c0_4 = arith.constant 0 : index
    %4 = vector.load %arg4[%c0_3, %c0_4] : memref<8x256xf32, #tpu.memory_space<vmem>>, vector<8x256xf32>
    tpu.vector_store %arg4[%c0_3, %c0_4], %3 {strides = array<i32>} : memref<8x256xf32, #tpu.memory_space<vmem>>, vector<8x256xf32>,
    return
  }
  func.func @transform_0(%arg0: i32, %arg1: i32) -> (i32, i32) {
    %c0_i32 = arith.constant 0 : i32
    %c0_i32_0 = arith.constant 0 : i32
    return %arg0, %c0_i32 : i32, i32
  }
  func.func @transform_1(%arg0: i32, %arg1: i32) -> (i32, i32) {
    %c0_i32 = arith.constant 0 : i32
    return %arg0, %arg1 : i32, i32
  }
  func.func @transform_2(%arg0: i32, %arg1: i32) -> (i32, i32) {
    %c0_i32 = arith.constant 0 : i32
    return %arg0, %arg1 : i32, i32
  }
}

</mosaic_0001>

<bundles_post_ra>
// kernel: drop_path.1
= control target key start
LH: loop header
LB: loop body
LE: loop exit
PB: predicated region body
PF: predicated region fallthrough
CT: control target
= control target key end

     0   :  { %v29_v0 = vmov 0   ;;  %s60_s0 = inlined_call_operand.vmem [shape: f32[8,1], index: 0, kind: input, shape index: {}]   ;;  %s61_s1 = inlined_call_operand.vmem [shape: f32[8,256], index: 1, kind: input, shape index: {}]   ;;  %s62_s2 = inlined_call_operand.vmem [shape: f32[8,256], index: 2, kind: output, shape index: {}]  }
   0x1   :  { %28 = vset.pattern.permute.xlu0 %v29_v0  ;;  %v13_v1 = vld [vmem:[%s60_s0] sm:$0xff]  ;;  %v12_v3 = vld [vmem:[%s61_s1 + $0x8] sm:$0xff] }
   0x2   :  { %16 = vperm.xlu0 %28, %v13_v1   ;;  %v11_v2 = vld [vmem:[%s61_s1] sm:$0xff] }
  0x81   :  { %v17_v4 = vpop.permute.xlu0 %16 }
  0x82   :  { %v19_v5 = vmul.f32 %v17_v4, %v11_v2  ;;  %v20_v6 = vmul.f32 %v17_v4, %v12_v3 }
  0x84   :  { %21 = vst [vmem:[%s62_s2] sm:$0xff] %v19_v5  ;;  %22 = vst [vmem:[%s62_s2 + $0x8] sm:$0xff] %v20_v6 }

</bundles_post_ra>
